<compile_context>
chip_gen: v7x
topology: tpu7x:2x2x1
jax: 0.10.0
libtpu: 0.0.40
codegen_flags: <defaults>
</compile_context>

<pallas_src>
import functools

import jax
import jax.numpy as jnp
from jax.experimental import pallas as pl
from jax.experimental.pallas import tpu as pltpu

LANE = 128  # lane width: trailing dims padded to multiples of 128


def _round_up(x, n):
    return (x + n - 1) // n * n


def _vmem_capacity_bytes():
    """Physical VMEM of the local TPU; conservative v7x fallback (64 MiB)."""
    try:
        info = pltpu.get_tpu_info()
        cap = getattr(info, "vmem_capacity_bytes", None)
        if cap:
            return int(cap)
    except Exception:
        pass
    return 64 * 1024 * 1024


def _working_set_bytes(tm, th, d_pad, x_itemsize):
    """Approximate VMEM working set of one grid step (incl. pipeline buffers)."""
    return (2 * tm * d_pad * x_itemsize      # x tile (double-buffered, input dtype)
            + 2 * d_pad * th * 2             # w1 tile bf16 (double-buffered, streamed)
            + 2 * th * 4                     # b1 tile f32 (double-buffered, streamed)
            + 2 * th * d_pad * 2             # w2 tile bf16 (double-buffered, streamed)
            + d_pad * 4                      # b2 f32 (single-buffered, invariant)
            + 2 * tm * d_pad * 4             # out tile f32 (double-buffered)
            + tm * d_pad * 4)                # f32 accumulator scratch


def _pick_tiles(d_pad, h_pad0, x_itemsize, budget, tm=256, th=None):
    """Pick (tm, th) so the working set fits `budget`; th a 256-multiple if possible."""
    if th is None:
        th = min(h_pad0, 2048)
        if th >= 256:
            th = (th // 256) * 256
    th = max(128, _round_up(th, 128))
    while th > 256 and _working_set_bytes(tm, th, d_pad, x_itemsize) > budget:
        th -= 256
    while tm > 64 and _working_set_bytes(tm, th, d_pad, x_itemsize) > budget:
        tm //= 2
    return tm, th


def _const_spec(shape, index_map):
    """BlockSpec for a grid-invariant operand; single-buffered when supported."""
    try:
        return pl.BlockSpec(shape, index_map, pipeline_mode=pl.Buffered(1))
    except TypeError:  # older jax without pipeline_mode kwarg
        return pl.BlockSpec(shape, index_map)


def feed_forward_kernel(x_ref, w1_ref, b1_ref, w2_ref, b2_ref, o_ref, acc_ref):
    # Grid: (M tiles [parallel], H tiles [arbitrary, last]).
    # x_ref:  [tm, Dp]  input dtype (cast to bf16 here, per-tile)
    # w1_ref: [Dp, th]  bf16   streamed over H
    # b1_ref: [1,  th]  f32    streamed over H
    # w2_ref: [th, Dp]  bf16   streamed over H
    # b2_ref: [1,  Dp]  f32    invariant (single-buffered)
    # o_ref:  [tm, Dp]  f32    written once per M tile
    # acc_ref:[tm, Dp]  f32    VMEM accumulator (persists across H steps)
    h_idx = pl.program_id(1)

    @pl.when(h_idx == 0)
    def _init():
        acc_ref[...] = jnp.zeros_like(acc_ref)

    x = x_ref[...].astype(w1_ref.dtype)
    # fc1 slice + ReLU: bf16 MXU inputs, f32 accumulation, bias in f32.
    h = jnp.dot(x, w1_ref[...], preferred_element_type=jnp.float32) + b1_ref[...]
    h = jnp.maximum(h, 0.0)
    # fc2 partial: accumulate this H slice's contribution in f32.
    acc_ref[...] += jnp.dot(h.astype(w2_ref.dtype), w2_ref[...],
                            preferred_element_type=jnp.float32)

    @pl.when(h_idx == pl.num_programs(1) - 1)
    def _finalize():
        # b2 added exactly once, single unmasked lane-dense store.
        o_ref[...] = (acc_ref[...] + b2_ref[...]).astype(o_ref.dtype)


def prepare_params(w1, b1, w2, b2, *, compute_dtype=jnp.bfloat16, tm=256, th=None):
    """Pad + cast weights/biases ONCE (not per forward call) and pick tiles.

    w1: [model_dim, hidden_dim], b1: [hidden_dim]
    w2: [hidden_dim, model_dim], b2: [model_dim]
    """
    model_dim, hidden_dim = w1.shape
    d_pad = _round_up(model_dim, LANE)
    h_pad0 = _round_up(hidden_dim, LANE)

    budget = int(0.75 * _vmem_capacity_bytes())
    tm, th = _pick_tiles(d_pad, h_pad0, 4, budget, tm=tm, th=th)
    h_pad = _round_up(h_pad0, th)

    w1_p = jnp.pad(w1, ((0, d_pad - model_dim), (0, h_pad - hidden_dim))).astype(compute_dtype)
    w2_p = jnp.pad(w2, ((0, h_pad - hidden_dim), (0, d_pad - model_dim))).astype(compute_dtype)
    b1_p = jnp.pad(b1, (0, h_pad - hidden_dim)).reshape(1, h_pad).astype(jnp.float32)
    b2_p = jnp.pad(b2, (0, d_pad - model_dim)).reshape(1, d_pad).astype(jnp.float32)

    return {
        "w1": w1_p, "b1": b1_p, "w2": w2_p, "b2": b2_p,
        "model_dim": model_dim, "hidden_dim": hidden_dim,
        "d_pad": d_pad, "h_pad": h_pad, "tm": tm, "th": th,
        "compute_dtype": compute_dtype,
    }


def feed_forward(x, params):
    """x: (batch, seq, model_dim).  Returns same shape / dtype."""
    batch, seq, model_dim = x.shape
    assert model_dim == params["model_dim"]
    d_pad, h_pad, th = params["d_pad"], params["h_pad"], params["th"]
    m = batch * seq

    tm_eff = min(params["tm"], _round_up(m, 8))
    m_pad = _round_up(m, tm_eff)
    grid_m = m_pad // tm_eff
    grid_h = h_pad // th

    x2d = x.reshape(m, model_dim)
    if m_pad == m and d_pad == model_dim:
        x_p = x2d                      # aligned case: no extra activation pass
    else:
        x_p = jnp.pad(x2d, ((0, m_pad - m), (0, d_pad - model_dim)))
    x_itemsize = jnp.dtype(x_p.dtype).itemsize

    cap = _vmem_capacity_bytes()
    est = _working_set_bytes(tm_eff, th, d_pad, x_itemsize)
    vmem_limit = int(min(0.9 * cap, max(1.5 * est + (2 << 20), 24 << 20)))

    cost = pl.CostEstimate(
        flops=int(4 * m_pad * d_pad * h_pad),        # two matmuls
        transcendentals=0,
        bytes_accessed=int(x_p.size * x_itemsize
                           + params["w1"].size * 2 + params["w2"].size * 2
                           + params["b1"].size * 4 + params["b2"].size * 4
                           + m_pad * d_pad * 4),
    )

    out_p = pl.pallas_call(
        feed_forward_kernel,
        out_shape=jax.ShapeDtypeStruct((m_pad, d_pad), jnp.float32),
        grid=(grid_m, grid_h),
        in_specs=[
            pl.BlockSpec((tm_eff, d_pad), lambda i, h: (i, 0)),   # x: tiled over M
            pl.BlockSpec((d_pad, th), lambda i, h: (0, h)),       # w1: streamed over H
            pl.BlockSpec((1, th), lambda i, h: (0, h)),           # b1: streamed over H
            pl.BlockSpec((th, d_pad), lambda i, h: (h, 0)),       # w2: streamed over H
            _const_spec((1, d_pad), lambda i, h: (0, 0)),         # b2: invariant
        ],
        out_specs=pl.BlockSpec((tm_eff, d_pad), lambda i, h: (i, 0)),
        scratch_shapes=[pltpu.VMEM((tm_eff, d_pad), jnp.float32)],
        compiler_params=pltpu.CompilerParams(
            dimension_semantics=("parallel", "arbitrary"),
            vmem_limit_bytes=vmem_limit),
        cost_estimate=cost,
    )(x_p, params["w1"], params["b1"], params["w2"], params["b2"])

    out = out_p[:m, :model_dim].astype(x.dtype)
    return out.reshape(batch, seq, model_dim)


def init_params(key, model_dim, hidden_dim):
    """Deterministic init mimicking nn.Linear's uniform(-1/sqrt(fan_in), ...)."""
    k1, k2, k3, k4 = jax.random.split(key, 4)
    bound1 = 1.0 / jnp.sqrt(model_dim)
    bound2 = 1.0 / jnp.sqrt(hidden_dim)
    # Stored transposed relative to torch (torch weight is [out, in]) so the
    # kernel does x @ w directly.
    w1 = jax.random.uniform(k1, (model_dim, hidden_dim), jnp.float32, -bound1, bound1)
    b1 = jax.random.uniform(k2, (hidden_dim,), jnp.float32, -bound1, bound1)
    w2 = jax.random.uniform(k3, (hidden_dim, model_dim), jnp.float32, -bound2, bound2)
    b2 = jax.random.uniform(k4, (model_dim,), jnp.float32, -bound2, bound2)
    return w1, b1, w2, b2


if __name__ == "__main__":
    model_dim = 6
    hidden_dim = 12

    key = jax.random.PRNGKey(0)
    k_x, k_p = jax.random.split(key)
    x = jax.random.normal(k_x, (2, 4, model_dim), dtype=jnp.float32)
    w1, b1, w2, b2 = init_params(k_p, model_dim, hidden_dim)

    # Pad/cast the weights ONCE (hoisted out of the per-call path).
    params = prepare_params(w1, b1, w2, b2)

    out = feed_forward(x, params)
    out = jax.block_until_ready(out)

    # Reference in plain JAX, applying the same bf16 rounding the kernel uses
    # (bf16 MXU inputs, f32 accumulation), at HIGHEST matmul precision.
    bf = lambda a: a.astype(jnp.bfloat16).astype(jnp.float32)
    x2d = x.reshape(-1, model_dim)
    h_ref = jnp.maximum(
        jnp.dot(bf(x2d), bf(w1), precision=jax.lax.Precision.HIGHEST) + b1, 0.0)
    ref = (jnp.dot(bf(h_ref), bf(w2), precision=jax.lax.Precision.HIGHEST)
           + b2).reshape(x.shape)

    assert out.shape == (2, 4, model_dim)
    assert jnp.allclose(out, ref, atol=1e-3, rtol=1e-3)

    print("KERNEL_OK")
</pallas_src>

<mosaic_0001>
module attributes {stable_mosaic.version = 11 : i64} {
  func.func @feed_forward_kernel(%arg0: i32, %arg1: i32, %arg2: memref<8x128xf32, #tpu.memory_space<vmem>>, %arg3: memref<128x128xbf16, #tpu.memory_space<vmem>>, %arg4: memref<1x128xf32, #tpu.memory_space<vmem>>, %arg5: memref<128x128xbf16, #tpu.memory_space<vmem>>, %arg6: memref<1x128xf32, #tpu.memory_space<vmem>>, %arg7: memref<8x128xf32, #tpu.memory_space<vmem>>, %arg8: memref<8x128xf32, #tpu.memory_space<vmem>>) attributes {dimension_semantics = [#tpu.dimension_semantics<parallel>, #tpu.dimension_semantics<arbitrary>], iteration_bounds = array<i64: 1, 1>, scalar_prefetch = 0 : i64, scratch_operands = 1 : i64, tpu.core_type = #tpu.core_type<tc>, window_params = [{transform_indices = @transform_0, window_bounds = array<i64: 8, 128>}, {transform_indices = @transform_1, window_bounds = array<i64: 128, 128>}, {transform_indices = @transform_2, window_bounds = array<i64: 1, 128>}, {transform_indices = @transform_3, window_bounds = array<i64: 128, 128>}, {pipeline_mode = #tpu.pipeline_mode<synchronous>, transform_indices = @transform_4, window_bounds = array<i64: 1, 128>}, {transform_indices = @transform_5, window_bounds = array<i64: 8, 128>}]} {
    %c0_i32 = arith.constant 0 : i32
    %0 = arith.cmpi eq, %arg1, %c0_i32 : i32
    %1 = arith.extui %0 : i1 to i32
    %c0_i32_0 = arith.constant 0 : i32
    %2 = arith.cmpi ne, %1, %c0_i32_0 : i32
    scf.if %2 {
      %cst_16 = arith.constant 0.000000e+00 : f32
      %21 = vector.broadcast %cst_16 : f32 to vector<8x128xf32>
      %c0_17 = arith.constant 0 : index
      %c0_18 = arith.constant 0 : index
      %22 = vector.load %arg8[%c0_17, %c0_18] : memref<8x128xf32, #tpu.memory_space<vmem>>, vector<8x128xf32>
      tpu.vector_store %arg8[%c0_17, %c0_18], %21 {strides = array<i32>} : memref<8x128xf32, #tpu.memory_space<vmem>>, vector<8x128xf32>,
    } else {
    }
    %c0 = arith.constant 0 : index
    %c0_1 = arith.constant 0 : index
    %3 = vector.load %arg2[%c0, %c0_1] : memref<8x128xf32, #tpu.memory_space<vmem>>, vector<8x128xf32>
    %4 = arith.truncf %3 : vector<8x128xf32> to vector<8x128xbf16>
    %c0_2 = arith.constant 0 : index
    %c0_3 = arith.constant 0 : index
    %5 = vector.load %arg3[%c0_2, %c0_3] : memref<128x128xbf16, #tpu.memory_space<vmem>>, vector<128x128xbf16>
    %cst = arith.constant dense<0.000000e+00> : vector<8x128xf32>
    %6 = tpu.matmul %4, %5, %cst {dimension_numbers = #tpu.dot_dimension_numbers<[1], [0], [0], [1], [0, 0, 1, 1], [], []>} : vector<8x128xbf16>, vector<128x128xbf16>, vector<8x128xf32> -> vector<8x128xf32>
    %c0_4 = arith.constant 0 : index
    %c0_5 = arith.constant 0 : index
    %7 = vector.load %arg4[%c0_4, %c0_5] : memref<1x128xf32, #tpu.memory_space<vmem>>, vector<1x128xf32>
    %8 = vector.broadcast %7 : vector<1x128xf32> to vector<8x128xf32>
    %9 = arith.addf %6, %8 : vector<8x128xf32>
    %cst_6 = arith.constant 0.000000e+00 : f32
    %10 = vector.broadcast %cst_6 : f32 to vector<8x128xf32>
    %11 = arith.maximumf %9, %10 : vector<8x128xf32>
    %c0_7 = arith.constant 0 : index
    %c0_8 = arith.constant 0 : index
    %12 = vector.load %arg8[%c0_7, %c0_8] : memref<8x128xf32, #tpu.memory_space<vmem>>, vector<8x128xf32>
    %13 = arith.truncf %11 : vector<8x128xf32> to vector<8x128xbf16>
    %c0_9 = arith.constant 0 : index
    %c0_10 = arith.constant 0 : index
    %14 = vector.load %arg5[%c0_9, %c0_10] : memref<128x128xbf16, #tpu.memory_space<vmem>>, vector<128x128xbf16>
    %cst_11 = arith.constant dense<0.000000e+00> : vector<8x128xf32>
    %15 = tpu.matmul %13, %14, %cst_11 {dimension_numbers = #tpu.dot_dimension_numbers<[1], [0], [0], [1], [0, 0, 1, 1], [], []>} : vector<8x128xbf16>, vector<128x128xbf16>, vector<8x128xf32> -> vector<8x128xf32>
    %16 = arith.addf %12, %15 : vector<8x128xf32>
    %c0_12 = arith.constant 0 : index
    %c0_13 = arith.constant 0 : index
    %17 = vector.load %arg8[%c0_12, %c0_13] : memref<8x128xf32, #tpu.memory_space<vmem>>, vector<8x128xf32>
    tpu.vector_store %arg8[%c0_12, %c0_13], %16 {strides = array<i32>} : memref<8x128xf32, #tpu.memory_space<vmem>>, vector<8x128xf32>,
    %c0_i32_14 = arith.constant 0 : i32
    %18 = arith.cmpi eq, %arg1, %c0_i32_14 : i32
    %19 = arith.extui %18 : i1 to i32
    %c0_i32_15 = arith.constant 0 : i32
    %20 = arith.cmpi ne, %19, %c0_i32_15 : i32
    scf.if %20 {
      %c0_16 = arith.constant 0 : index
      %c0_17 = arith.constant 0 : index
      %21 = vector.load %arg8[%c0_16, %c0_17] : memref<8x128xf32, #tpu.memory_space<vmem>>, vector<8x128xf32>
      %c0_18 = arith.constant 0 : index
      %c0_19 = arith.constant 0 : index
      %22 = vector.load %arg6[%c0_18, %c0_19] : memref<1x128xf32, #tpu.memory_space<vmem>>, vector<1x128xf32>
      %23 = vector.broadcast %22 : vector<1x128xf32> to vector<8x128xf32>
      %24 = arith.addf %21, %23 : vector<8x128xf32>
      %c0_20 = arith.constant 0 : index
      %c0_21 = arith.constant 0 : index
      %25 = vector.load %arg7[%c0_20, %c0_21] : memref<8x128xf32, #tpu.memory_space<vmem>>, vector<8x128xf32>
      tpu.vector_store %arg7[%c0_20, %c0_21], %24 {strides = array<i32>} : memref<8x128xf32, #tpu.memory_space<vmem>>, vector<8x128xf32>,
    } else {
    }
    return
  }
  func.func @transform_0(%arg0: i32, %arg1: i32) -> (i32, i32) {
    %c0_i32 = arith.constant 0 : i32
    %c0_i32_0 = arith.constant 0 : i32
    return %arg0, %c0_i32 : i32, i32
  }
  func.func @transform_1(%arg0: i32, %arg1: i32) -> (i32, i32) {
    %c0_i32 = arith.constant 0 : i32
    %c0_i32_0 = arith.constant 0 : i32
    return %c0_i32, %arg1 : i32, i32
  }
  func.func @transform_2(%arg0: i32, %arg1: i32) -> (i32, i32) {
    %c0_i32 = arith.constant 0 : i32
    %c0_i32_0 = arith.constant 0 : i32
    return %c0_i32, %arg1 : i32, i32
  }
  func.func @transform_3(%arg0: i32, %arg1: i32) -> (i32, i32) {
    %c0_i32 = arith.constant 0 : i32
    %c0_i32_0 = arith.constant 0 : i32
    return %arg1, %c0_i32 : i32, i32
  }
  func.func @transform_4(%arg0: i32, %arg1: i32) -> (i32, i32) {
    %c0_i32 = arith.constant 0 : i32
    %c0_i32_0 = arith.constant 0 : i32
    %c0_i32_1 = arith.constant 0 : i32
    return %c0_i32, %c0_i32_0 : i32, i32
  }
  func.func @transform_5(%arg0: i32, %arg1: i32) -> (i32, i32) {
    %c0_i32 = arith.constant 0 : i32
    %c0_i32_0 = arith.constant 0 : i32
    return %arg0, %c0_i32 : i32, i32
  }
}

</mosaic_0001>

<bundles_post_ra>
// kernel: tpu_custom_call.1
= control target key start
LH: loop header
LB: loop body
LE: loop exit
PB: predicated region body
PF: predicated region fallthrough
CT: control target
= control target key end

     0   :  { %10 = vsyncpa [#allocation4], 0  ;;  %s609_s0 = inlined_call_operand.hbm [shape: f32[8,128], index: 0, kind: input, shape index: {}]   ;;  %s610_s1 = inlined_call_operand.hbm [shape: bf16[128,128], index: 1, kind: input, shape index: {}]   ;;  %s611_s2 = inlined_call_operand.vmem [shape: f32[1,128], index: 2, kind: input, shape index: {}]   ;;  %s612_s3 = inlined_call_operand.hbm [shape: bf16[128,128], index: 3, kind: input, shape index: {}]   ;;  %s613_s4 = inlined_call_operand.vmem [shape: f32[1,128], index: 4, kind: input, shape index: {}]   ;;  %s614_s5 = inlined_call_operand.hbm [shape: f32[8,128], index: 5, kind: output, shape index: {}]  }
   0x1   :  { %11 = vsyncpa [#allocation7], 0 }
   0x2   :  { %12 = vsyncpa [#allocation5], 0  ;;  %s511_s18 = smov [#allocation6]   ;;  %s417_s22 = scalar_lea.hbm %s610_s1, 1024 }
   0x3   :  { %s28_s19 = sshll.u32 %s511_s18, 4  ;;  %p418_p0 = scmp.ne.s32.totalorder %s610_s1, %s417_s22  ;;  %s29_s19 = int_to_ptr.vmem [resolvable:$true] %s28_s19 }
   0x4   :  { %p421_p1 = scmp.lt.u32.totalorder %s417_s22, %s610_s1 }
   0x6   :  { %p423_p2 = pnand %p421_p1, %p418_p0 }
   0x8   :  { %426 = shalt.err (!%p423_p2)
}
   0x9   :  { %s427_s27 = scalar_lea.vmem %s29_s19, 1024  ;;  %p432_p4 = scmp.lt.s32.totalorder %s29_s19, %s29_s19 }
   0xa   :  { %p428_p3 = scmp.ne.s32.totalorder %s29_s19, %s427_s27  ;;  %p433_p5 = scmp.lt.s32.totalorder %s427_s27, %s427_s27 }
   0xc   :  { %p434_p6 = por %p433_p5, %p432_p4 }
   0xe   :  { %p435_p7 = pnand %p434_p6, %p428_p3 }
  0x10   :  { %438 = shalt.err (!%p435_p7)
}
  0x11   :  { %s512_s28 = smov 64   ;;  %s513_s29 = smov 4  }
  0x12   :  { %34 = dma.hbm_to_vmem [thread:$0]  %s610_s1, 1024, %s29_s19, [#allocation7], %s512_s28, %s512_s28, %s513_s29  }
  0x13   :  { %s514_s7 = smov [#allocation3]   ;;  %s515_s9 = smov [#allocation8]  }
  0x14   :  { %s19_s8 = sshll.u32 %s514_s7, 4  ;;  %s42_s10 = sshll.u32 %s515_s9, 4  ;;  %s20_s8 = int_to_ptr.vmem [resolvable:$true] %s19_s8  ;;  %s43_s10 = int_to_ptr.vmem [resolvable:$true] %s42_s10 }
  0x15   :  { %s439_s13 = scalar_lea.hbm %s609_s0, 128 }
  0x16   :  { %p440_p8 = scmp.ne.s32.totalorder %s609_s0, %s439_s13  ;;  %p443_p9 = scmp.lt.u32.totalorder %s439_s13, %s609_s0 }
  0x18   :  { %p445_p10 = pnand %p443_p9, %p440_p8 }
  0x1a   :  { %448 = shalt.err (!%p445_p10)
}
  0x1b   :  { %s449_s1 = scalar_lea.vmem %s20_s8, 128  ;;  %p454_p12 = scmp.lt.s32.totalorder %s20_s8, %s20_s8 }
  0x1c   :  { %p450_p11 = scmp.ne.s32.totalorder %s20_s8, %s449_s1  ;;  %p455_p13 = scmp.lt.s32.totalorder %s449_s1, %s449_s1 }
  0x1e   :  { %p456_p0 = por %p455_p13, %p454_p12 }
  0x20   :  { %p457_p1 = pnand %p456_p0, %p450_p11 }
  0x22   :  { %460 = shalt.err (!%p457_p1)
}
  0x23   :  { %22 = dma.hbm_to_vmem [thread:$0]  %s609_s0, 128, %s20_s8, [#allocation4]  }
  0x24   :  { %s461_s22 = scalar_lea.hbm %s612_s3, 1024 }
  0x25   :  { %p462_p2 = scmp.ne.s32.totalorder %s612_s3, %s461_s22  ;;  %p465_p3 = scmp.lt.u32.totalorder %s461_s22, %s612_s3 }
  0x27   :  { %p467_p4 = pnand %p465_p3, %p462_p2 }
  0x29   :  { %470 = shalt.err (!%p467_p4)
}
  0x2a   :  { %s471_s27 = scalar_lea.vmem %s43_s10, 1024  ;;  %p476_p6 = scmp.lt.s32.totalorder %s43_s10, %s43_s10 }
  0x2b   :  { %p472_p5 = scmp.ne.s32.totalorder %s43_s10, %s471_s27  ;;  %p477_p7 = scmp.lt.s32.totalorder %s471_s27, %s471_s27 }
  0x2d   :  { %p478_p8 = por %p477_p7, %p476_p6 }
  0x2f   :  { %p479_p9 = pnand %p478_p8, %p472_p5 }
  0x31   :  { %482 = shalt.err (!%p479_p9)
}
  0x32   :  { %48 = dma.hbm_to_vmem [thread:$0]  %s612_s3, 1024, %s43_s10, [#allocation7], %s512_s28, %s512_s28, %s513_s29  }
  0x33   :  { %505 = dma.done.wait [#allocation4], 128  }
  0x34   :  { %506 = vsyncadd [#allocation4], 4294967168 }
  0x35   :  { %507 = dma.done.wait [#allocation7], 2048  }
  0x36   :  { %508 = vsyncadd [#allocation7], 4294965248  ;;  %v516_v0 = vmov 0.0   ;;  %vm517_vm0 = vmmov 0   ;;  %v401_v1 = vld [vmem:[#allocation6] sm:$0xff]   ;;  %v402_v2 = vld [vmem:[#allocation6 + $0x8] sm:$0xff]  }
  0x37   :  { %353 = vmatprep.subr.bf16.mxu0 %v516_v0  ;;  %369 = vmatprep.mubr.msk.bf16.mxu0 %vm517_vm0, %v516_v0  ;;  %v403_v3 = vld [vmem:[#allocation6 + $0x10] sm:$0xff]   ;;  %v409_v4 = vld [vmem:[#allocation8] sm:$0xff]   ;;  %v404_v5 = vld [vmem:[#allocation6 + $0x18] sm:$0xff]   ;;  %s518_s7 = smov [#allocation9]  }
  0x38   :  { %373 = vmatprep.subr.bf16.mxu1 %v516_v0  ;;  %389 = vmatprep.mubr.msk.bf16.mxu1 %vm517_vm0, %v516_v0  ;;  %v410_v6 = vld [vmem:[#allocation8 + $0x8] sm:$0xff]   ;;  %v405_v7 = vld [vmem:[#allocation6 + $0x20] sm:$0xff]   ;;  %v411_v8 = vld [vmem:[#allocation8 + $0x10] sm:$0xff]   ;;  %s307_s8 = sshll.u32 %s518_s7, 4  ;;  %s308_s8 = int_to_ptr.vmem [resolvable:$true] %s307_s8 }
  0x39   :  { %354 = vmatpush3.bf16.msra.mxu0 %v401_v1  ;;  %374 = vmatpush3.bf16.msra.mxu1 %v409_v4  ;;  %v406_v9 = vld [vmem:[#allocation6 + $0x28] sm:$0xff]   ;;  %v412_v10 = vld [vmem:[#allocation8 + $0x18] sm:$0xff]   ;;  %v407_v11 = vld [vmem:[#allocation6 + $0x30] sm:$0xff]   ;;  %p488_p11 = scmp.lt.s32.totalorder %s308_s8, %s308_s8 }
  0x3a   :  { %355 = vmatprep.subr.bf16.mxu0 %v516_v0  ;;  %375 = vmatprep.subr.bf16.mxu1 %v516_v0  ;;  %v413_v12 = vld [vmem:[#allocation8 + $0x20] sm:$0xff]   ;;  %v408_v13 = vld [vmem:[#allocation6 + $0x38] sm:$0xff]   ;;  %v414_v15 = vld [vmem:[#allocation8 + $0x28] sm:$0xff]  }
  0x3b   :  { %v66_v14 = vld [vmem:[#allocation3] sm:$0xff]  ;;  %v415_v17 = vld [vmem:[#allocation8 + $0x30] sm:$0xff]  }
  0x3c   :  { %v67_v16 = vpack.c.bf16 %v66_v14, %v66_v14  ;;  %v416_v18 = vld [vmem:[#allocation8 + $0x38] sm:$0xff]  }
  0x3d   :  { %356 = vmatpush3.bf16.msra.mxu0 %v402_v2  ;;  %376 = vmatpush3.bf16.msra.mxu1 %v410_v6  ;;  %v317_v19 = vld [vmem:[%s611_s2] ss:$0 sm:$0xff]  ;;  %s483_s2 = scalar_lea.vmem %s308_s8, 128 }
  0x3e   :  { %357 = vmatprep.subr.bf16.mxu0 %v516_v0  ;;  %377 = vmatprep.subr.bf16.mxu1 %v516_v0  ;;  %v334_v27 = vld [vmem:[%s613_s4] ss:$0 sm:$0xff]  ;;  %p484_p10 = scmp.ne.s32.totalorder %s308_s8, %s483_s2  ;;  %p489_p12 = scmp.lt.s32.totalorder %s483_s2, %s483_s2 }
  0x40   :  { %p490_p13 = por %p489_p12, %p488_p11 }
  0x41   :  { %358 = vmatpush3.bf16.msra.mxu0 %v403_v3  ;;  %378 = vmatpush3.bf16.msra.mxu1 %v411_v8 }
  0x42   :  { %359 = vmatprep.subr.bf16.mxu0 %v516_v0  ;;  %379 = vmatprep.subr.bf16.mxu1 %v516_v0  ;;  %p491_p0 = pnand %p490_p13, %p484_p10 }
  0x45   :  { %360 = vmatpush3.bf16.msra.mxu0 %v404_v5  ;;  %380 = vmatpush3.bf16.msra.mxu1 %v412_v10 }
  0x46   :  { %361 = vmatprep.subr.bf16.mxu0 %v516_v0  ;;  %381 = vmatprep.subr.bf16.mxu1 %v516_v0 }
  0x49   :  { %362 = vmatpush3.bf16.msra.mxu0 %v405_v7  ;;  %382 = vmatpush3.bf16.msra.mxu1 %v413_v12 }
  0x4a   :  { %363 = vmatprep.subr.bf16.mxu0 %v516_v0  ;;  %383 = vmatprep.subr.bf16.mxu1 %v516_v0 }
  0x4d   :  { %364 = vmatpush3.bf16.msra.mxu0 %v406_v9  ;;  %384 = vmatpush3.bf16.msra.mxu1 %v414_v15 }
  0x4e   :  { %365 = vmatprep.subr.bf16.mxu0 %v516_v0  ;;  %385 = vmatprep.subr.bf16.mxu1 %v516_v0 }
  0x51   :  { %366 = vmatpush3.bf16.msra.mxu0 %v407_v11  ;;  %386 = vmatpush3.bf16.msra.mxu1 %v415_v17 }
  0x52   :  { %367 = vmatprep.subr.bf16.mxu0 %v516_v0  ;;  %387 = vmatprep.subr.bf16.mxu1 %v516_v0 }
  0x55   :  { %368 = vmatpush3.bf16.msra.mxu0 %v408_v13  ;;  %388 = vmatpush3.bf16.msra.mxu1 %v416_v18 }
  0x58   :  { %370 = vmatmul.mubr.bf16.vlgmr.msra.gmra.mrb[0].mxu0 %v67_v16 }
 0x12b   :  { %v173_v20 = vpop.f32.mrb[0].mxu0 }
 0x12c   :  { %v174_v21 = vadd.f32 %v317_v19, %v173_v20  ;;  %v371_v22 = vpop.f32.mrb[1].mxu0 }
 0x12d   :  { %v176_v23 = vpop.f32.mrb[2].mxu0 }
 0x12e   :  { %v179_v24 = vmax.f32 %v174_v21, 0.0  ;;  %v372_v25 = vpop.f32.mrb[3].mxu0 }
 0x130   :  { %v181_v26 = vpack.c.bf16 %v179_v24, %v179_v24 }
 0x132   :  { %390 = vmatmul.mubr.bf16.vlgmr.msra.gmra.mrb[0].mxu1 %v181_v26 }
 0x205   :  { %v280_v28 = vpop.f32.mrb[0].mxu1 }
 0x206   :  { %v299_v29 = vadd.f32 %v334_v27, %v280_v28  ;;  %v391_v30 = vpop.f32.mrb[1].mxu1 }
 0x207   :  { %v283_v31 = vpop.f32.mrb[2].mxu1 }
 0x208   :  { %300 = vst [vmem:[#allocation9] sm:$0xff] %v299_v29  ;;  %v392_v32 = vpop.f32.mrb[3].mxu1 }
 0x209   :  { %494 = shalt.err (!%p491_p0)
}
 0x20a   :  { %s495_s4 = scalar_lea.hbm %s614_s5, 128 }
 0x20b   :  { %p496_p1 = scmp.ne.s32.totalorder %s614_s5, %s495_s4  ;;  %p499_p2 = scmp.lt.u32.totalorder %s495_s4, %s614_s5 }
 0x20d   :  { %p501_p3 = pnand %p499_p2, %p496_p1 }
 0x20f   :  { %504 = shalt.err (!%p501_p3)
}
 0x210   :  { %310 = dma.vmem_to_hbm [thread:$0]  %s308_s8, 128, %s614_s5, [#allocation5]  }
 0x211   :  { %509 = dma.done.wait [#allocation5], 128  }
 0x212   :  { %510 = vsyncadd [#allocation5], 4294967168 }
 0x213   :  { %314 = vsyncpa [#allocation4], 1 }
 0x214   :  { %315 = vsyncpa [#allocation7], 1 }
 0x215   :  { %316 = vsyncpa [#allocation5], 1 }

</bundles_post_ra>
